<compile_context>
chip_gen: v5e
topology: v5e:2x2
jax: 0.10.0
libtpu: 0.0.40
codegen_flags: <defaults>
</compile_context>

<pallas_src>
import jax
import jax.numpy as jnp
from jax.experimental import pallas as pl
from jax.experimental.pallas import tpu as pltpu

# Synthetic, deterministic constants (the reference module pulls these from
# module-level globals PRESSURE_MIN / PRESSURE_MAX / PRESSURE_STEP).
PRESSURE_MIN = 0.0
PRESSURE_MAX = 1.0
PRESSURE_STEP = 0.05

# TODO(synk): the PyTorch module also defines a straight-through-estimator
# backward (my_round_func.backward passes the gradient through); only the
# forward pass is implemented here.

_LANE_CANDIDATES = (4096, 2048, 1024, 512, 256, 128)
_TARGET_BLOCK_BYTES = 2 << 20  # ~2 MiB per pipeline buffer


def _scale_kernel(x_ref, o_ref):
    x = x_ref[...]
    dt = x.dtype
    # constants in the compute dtype (matches the torch module, which computes
    # in the input dtype); inv_step precomputed once.
    inv_step = jnp.asarray(1.0 / PRESSURE_STEP, dt)
    step = jnp.asarray(PRESSURE_STEP, dt)
    pmin = jnp.asarray(PRESSURE_MIN, dt)
    pmax = jnp.asarray(PRESSURE_MAX, dt)
    if PRESSURE_MIN == 0.0:
        rescaled = jnp.round(x * inv_step) * step
    else:
        rescaled = jnp.round((x - pmin) * inv_step) * step + pmin
    o_ref[...] = jnp.clip(rescaled, pmin, pmax)


def _sublane_multiple(dtype):
    itemsize = jnp.dtype(dtype).itemsize
    return {4: 8, 2: 16, 1: 32}.get(itemsize, 8)


def _choose_tile_rows(rows, lanes, itemsize, sub):
    """Pick a sublane-aligned row tile giving ~2 MiB blocks."""
    row_bytes = lanes * itemsize
    max_rows = max(1, _TARGET_BLOCK_BYTES // row_bytes)
    if rows <= max_rows:
        # whole row extent as a single block (full array dim -> always legal)
        return rows
    # largest multiple of `sub` <= max_rows that evenly divides rows
    # (avoids a masked partial tail block)
    t = (max_rows // sub) * sub
    while t >= sub:
        if rows % t == 0:
            return t
        t -= sub
    # fallback: biggest sub-aligned tile; the last grid step is a masked
    # partial block, which Pallas handles correctly.
    return max(sub, (max_rows // sub) * sub)


def scale_layer(x, *, donate_input: bool = False):
    """Elementwise quantize-and-clamp, computed in a Pallas kernel.

    x: any shape, float dtype. Returns same shape/dtype.
    donate_input: if True, alias the input HBM buffer to the output
      (input_output_aliases={0: 0}); the caller must not reuse `x` afterwards.
    """
    orig_shape = x.shape
    n = x.size
    if n == 0:
        return x
    dtype = x.dtype
    itemsize = jnp.dtype(dtype).itemsize
    sub = _sublane_multiple(dtype)

    # pick a wide, lane-dense last dim that divides n (no pad in that case)
    lanes = next((L for L in _LANE_CANDIDATES if n % L == 0), None)
    padded = lanes is None
    if padded:
        lanes = 512
    rows = pl.cdiv(n, lanes)

    flat = x.reshape(-1)
    if padded:
        # rare remainder case only; common NCHW shapes take the no-copy path
        flat = jnp.pad(flat, (0, rows * lanes - n))
    slab = flat.reshape(rows, lanes)

    tile_rows = _choose_tile_rows(rows, lanes, itemsize, sub)
    grid = (pl.cdiv(rows, tile_rows),)

    extra = {}
    if donate_input:
        extra["input_output_aliases"] = {0: 0}

    out = pl.pallas_call(
        _scale_kernel,
        out_shape=jax.ShapeDtypeStruct((rows, lanes), dtype),
        grid_spec=pltpu.PrefetchScalarGridSpec(
            num_scalar_prefetch=0,
            grid=grid,
            in_specs=[pl.BlockSpec((tile_rows, lanes), lambda i: (i, 0))],
            out_specs=pl.BlockSpec((tile_rows, lanes), lambda i: (i, 0)),
        ),
        compiler_params=pltpu.CompilerParams(
            dimension_semantics=("parallel",)),
        **extra,
    )(slab)

    if padded:
        out = out.reshape(-1)[:n]
    return out.reshape(orig_shape)


if __name__ == "__main__":
    key = jax.random.PRNGKey(0)
    # NCHW input, small shape consistent with the module's elementwise forward
    x = jax.random.uniform(key, (2, 4, 16, 16), dtype=jnp.float32,
                           minval=-0.5, maxval=1.5)

    y = scale_layer(x)
    jax.block_until_ready(y)

    # correctness check against a plain-JAX reference using the same arithmetic
    inv_step = jnp.asarray(1.0 / PRESSURE_STEP, x.dtype)
    ref = jnp.clip(
        jnp.round((x - PRESSURE_MIN) * inv_step) * PRESSURE_STEP + PRESSURE_MIN,
        PRESSURE_MIN, PRESSURE_MAX)
    assert jnp.allclose(y, ref, atol=1e-6), "mismatch vs reference"

    print("KERNEL_OK")
</pallas_src>

<mosaic_0001>
module attributes {stable_mosaic.version = 11 : i64} {
  func.func @_scale_kernel(%arg0: i32, %arg1: memref<1x2048xf32, #tpu.memory_space<vmem>>, %arg2: memref<1x2048xf32, #tpu.memory_space<vmem>>) attributes {dimension_semantics = [#tpu.dimension_semantics<parallel>], iteration_bounds = array<i64: 1>, scalar_prefetch = 0 : i64, scratch_operands = 0 : i64, tpu.core_type = #tpu.core_type<tc>, window_params = [{transform_indices = @transform_0, window_bounds = array<i64: 1, 2048>}, {transform_indices = @transform_1, window_bounds = array<i64: 1, 2048>}]} {
    %c0 = arith.constant 0 : index
    %c0_0 = arith.constant 0 : index
    %0 = vector.load %arg1[%c0, %c0_0] : memref<1x2048xf32, #tpu.memory_space<vmem>>, vector<1x2048xf32>
    %cst = arith.constant 2.000000e+01 : f32
    %1 = vector.broadcast %cst : f32 to vector<1x2048xf32>
    %2 = arith.mulf %0, %1 : vector<1x2048xf32>
    %3 = math.roundeven %2 : vector<1x2048xf32>
    %cst_1 = arith.constant 5.000000e-02 : f32
    %4 = vector.broadcast %cst_1 : f32 to vector<1x2048xf32>
    %5 = arith.mulf %3, %4 : vector<1x2048xf32>
    %cst_2 = arith.constant 0.000000e+00 : f32
    %cst_3 = arith.constant 1.000000e+00 : f32
    %6 = vector.broadcast %cst_2 : f32 to vector<1x2048xf32>
    %7 = arith.maximumf %6, %5 : vector<1x2048xf32>
    %8 = vector.broadcast %cst_3 : f32 to vector<1x2048xf32>
    %9 = arith.minimumf %8, %7 : vector<1x2048xf32>
    %c0_4 = arith.constant 0 : index
    %c0_5 = arith.constant 0 : index
    %10 = vector.load %arg2[%c0_4, %c0_5] : memref<1x2048xf32, #tpu.memory_space<vmem>>, vector<1x2048xf32>
    tpu.vector_store %arg2[%c0_4, %c0_5], %9 {strides = array<i32>} : memref<1x2048xf32, #tpu.memory_space<vmem>>, vector<1x2048xf32>,
    return
  }
  func.func @transform_0(%arg0: i32) -> (i32, i32) {
    %c0_i32 = arith.constant 0 : i32
    %c0_i32_0 = arith.constant 0 : i32
    return %arg0, %c0_i32 : i32, i32
  }
  func.func @transform_1(%arg0: i32) -> (i32, i32) {
    %c0_i32 = arith.constant 0 : i32
    %c0_i32_0 = arith.constant 0 : i32
    return %arg0, %c0_i32 : i32, i32
  }
}

</mosaic_0001>

<bundles_post_ra>
// kernel: tpu_custom_call.1
= control target key start
LH: loop header
LB: loop body
LE: loop exit
PB: predicated region body
PF: predicated region fallthrough
CT: control target
= control target key end

     0   :  { %6 = vsyncpa [#allocation3], 0  ;;  %s142_s0 = inlined_call_operand.hbm [shape: f32[1,2048], index: 0, kind: input, shape index: {}]   ;;  %s143_s1 = inlined_call_operand.hbm [shape: f32[1,2048], index: 1, kind: output, shape index: {}]  }
   0x1   :  { %7 = vsyncpa [#allocation4], 0  ;;  %s13_s8 = sshll.u32 %s142_s0, 4  ;;  %s124_s9 = smov [#allocation2]   ;;  %s14_s8 = int_to_ptr.hbm [resolvable:$true] %s13_s8 }
   0x2   :  { %s15_s10 = sshll.u32 %s124_s9, 4  ;;  %s16_s10 = int_to_ptr.vmem [resolvable:$true] %s15_s10 }
   0x3   :  { %18 = dma.hbm_to_vmem [thread:$0]  %s14_s8, 256, %s16_s10, [#allocation3]  }
   0x4   :  { %120 = dma.done.wait [#allocation3], 256  }
   0x5   :  { %121 = vsyncadd [#allocation3], 4294967040  ;;  %v23_v0 = vld [vmem:[#allocation2] sm:$0xff]  ;;  %v24_v1 = vld [vmem:[#allocation2 + $0x8] sm:$0xff]  ;;  %s125_s0 = smov [#allocation5]   ;;  %s44_s14 = sshll.u32 %s143_s1, 4  ;;  %s45_s14 = int_to_ptr.hbm [resolvable:$true] %s44_s14 }
   0x6   :  { %v25_v2 = vmul.f32 20.0, %v23_v0  ;;  %v26_v3 = vmul.f32 20.0, %v24_v1  ;;  %s42_s11 = sshll.u32 %s125_s0, 4  ;;  %s43_s11 = int_to_ptr.vmem [resolvable:$true] %s42_s11 }
   0x8   :  { %v56_v4 = vcvt.f32.s32 %v25_v2  ;;  %v54_v5 = vand.u32 2147483647, %v25_v2  ;;  %v64_v6 = vcvt.f32.s32 %v26_v3  ;;  %v59_v8 = vand.u32 2147483648, %v25_v2 }
   0x9   :  { %v62_v9 = vand.u32 2147483647, %v26_v3  ;;  %v67_v11 = vand.u32 2147483648, %v26_v3 }
   0xa   :  { %v57_v7 = vcvt.s32.f32 %v56_v4  ;;  %v65_v10 = vcvt.s32.f32 %v64_v6  ;;  %vm55_vm0 = vcmp.lt.f32.partialorder %v54_v5, 8388608.0 }
   0xb   :  { %vm63_vm1 = vcmp.lt.f32.partialorder %v62_v9, 8388608.0 }
   0xc   :  { %v58_v12 = vand.u32 2147483647, %v57_v7  ;;  %v66_v13 = vand.u32 2147483647, %v65_v10 }
   0xe   :  { %v60_v14 = vor.u32 %v59_v8, %v58_v12  ;;  %v68_v15 = vor.u32 %v67_v11, %v66_v13 }
  0x10   :  { %v61_v16 = vsel %vm55_vm0, %v60_v14, %v25_v2  ;;  %v69_v18 = vsel %vm63_vm1, %v68_v15, %v26_v3 }
  0x11   :  { %v29_v17 = vmul.f32 0.05, %v61_v16  ;;  %v30_v19 = vmul.f32 0.05, %v69_v18 }
  0x13   :  { %v31_v20 = vmax.f32 %v29_v17, 0.0  ;;  %v32_v21 = vmax.f32 %v30_v19, 0.0 }
  0x15   :  { %v33_v22 = vmin.f32 %v31_v20, 1.0  ;;  %v34_v23 = vmin.f32 %v32_v21, 1.0 }
  0x17   :  { %35 = vst [vmem:[#allocation5] sm:$0xff] %v33_v22 }
  0x18   :  { %36 = vst [vmem:[#allocation5 + $0x8] sm:$0xff] %v34_v23 }
  0x19   :  { %47 = dma.vmem_to_hbm [thread:$0]  %s43_s11, 256, %s45_s14, [#allocation4]  }
  0x1a   :  { %122 = dma.done.wait [#allocation4], 256  }
  0x1b   :  { %123 = vsyncadd [#allocation4], 4294967040 }
  0x1c   :  { %52 = vsyncpa [#allocation3], 1 }
  0x1d   :  { %53 = vsyncpa [#allocation4], 1 }

</bundles_post_ra>
